<compile_context>
chip_gen: v5e
topology: v5e:2x2
jax: 0.10.0
libtpu: 0.0.40
codegen_flags: <defaults>
</compile_context>

<pallas_src>
import functools

import jax
import jax.numpy as jnp
from jax.experimental import pallas as pl
from jax.experimental.pallas import tpu as pltpu


# ----------------------------- Pallas kernel --------------------------------
def _conv_meanpool_kernel(x_ref, w_ref, b_ref, o_ref, *, h, w, kh, kw):
    """Fused conv(kxk, 'same') + global average pool for one batch element.

    x_ref : (1, Cin, H, W)       raw NCHW image slab (VMEM)
    w_ref : (kh, kw, Cin, Cout)  conv weights, tap-major (VMEM, resident)
    b_ref : (1, Cout)            conv bias (VMEM, resident)
    o_ref : (1, 1, Cout)         pooled output row for this batch element
    """
    x = x_ref[0]                                   # (Cin, H, W) f32
    cin = x.shape[0]
    cout = o_ref.shape[-1]
    ph, pw = kh // 2, kw // 2
    inv_hw = jnp.float32(1.0 / (h * w))

    # One column-sum pass over rows (sublane reduce); every tap's spatial sum
    # is then this total minus the rows/cols that fall on the zero padding.
    cs_all = jnp.sum(x, axis=1)                    # (Cin, W)

    # Accumulate per-(channel, out-channel) contributions; reduce over Cin once.
    acc_cc = jnp.zeros((cin, cout), dtype=jnp.float32)

    for ki in range(kh):                           # static, unrolled at trace
        top_ex = max(ki - ph, 0)                   # rows excluded at the top
        bot_ex = max(ph - ki, 0)                   # rows excluded at the bottom
        cs = cs_all
        if top_ex:
            cs = cs - jnp.sum(x[:, :top_ex, :], axis=1)
        if bot_ex:
            cs = cs - jnp.sum(x[:, h - bot_ex:, :], axis=1)

        tot = jnp.sum(cs, axis=1, keepdims=True)   # (Cin, 1) lane reduce

        for kj in range(kw):
            left_ex = max(kj - pw, 0)              # cols excluded on the left
            right_ex = max(pw - kj, 0)             # cols excluded on the right
            tap = tot                              # (Cin, 1) tap spatial sum
            if left_ex:
                tap = tap - jnp.sum(cs[:, :left_ex], axis=1, keepdims=True)
            if right_ex:
                tap = tap - jnp.sum(cs[:, w - right_ex:], axis=1, keepdims=True)

            # Channel mix on the VPU: (Cin,1) broadcast * (Cin,Cout).
            acc_cc = acc_cc + tap * w_ref[ki, kj]

    pooled = jnp.sum(acc_cc, axis=0, keepdims=True)        # (1, Cout)
    o_ref[0] = pooled * inv_hw + b_ref[...]                 # single store


# ------------------------------ JAX wrapper ----------------------------------
def backbone_wrapper_forward(x_nchw, conv_w, conv_b):
    """Equivalent of BackboneWrapper(Conv2d backbone).forward(x).

    x_nchw : (B, Cin, H, W) float32
    conv_w : (Cout, Cin, kh, kw) float32   (PyTorch conv weight layout)
    conv_b : (Cout,) float32
    returns (B, Cout) float32
    """
    b, cin, h, w = x_nchw.shape
    cout, _, kh, kw = conv_w.shape

    # (Cout, Cin, kh, kw) -> (kh, kw, Cin, Cout): per-tap (Cin, Cout) slices.
    w4 = jnp.transpose(conv_w, (2, 3, 1, 0))
    b2 = conv_b.reshape(1, cout)

    kernel = functools.partial(_conv_meanpool_kernel, h=h, w=w, kh=kh, kw=kw)

    # Grid over batch: the raw NCHW image is the only big stream and it is
    # double-buffered by the BlockSpec pipeline.  Output is kept 3-D
    # (B, 1, Cout) so each block's trailing two dims equal the full array
    # dims (clean TPU layout), then squeezed back to (B, Cout).
    out3 = pl.pallas_call(
        kernel,
        out_shape=jax.ShapeDtypeStruct((b, 1, cout), jnp.float32),
        grid_spec=pltpu.PrefetchScalarGridSpec(
            num_scalar_prefetch=0,
            grid=(b,),
            in_specs=[
                pl.BlockSpec((1, cin, h, w), lambda i: (i, 0, 0, 0)),        # image
                pl.BlockSpec((kh, kw, cin, cout), lambda i: (0, 0, 0, 0)),   # weights
                pl.BlockSpec((1, cout), lambda i: (0, 0)),                   # bias
            ],
            out_specs=pl.BlockSpec((1, 1, cout), lambda i: (i, 0, 0)),
        ),
        compiler_params=pltpu.CompilerParams(
            dimension_semantics=("parallel",)),   # shards batch across TCs
    )(x_nchw, w4, b2)
    return out3.reshape(b, cout)


# ------------------------------ pure-JAX ref ----------------------------------
def _reference(x_nchw, conv_w, conv_b):
    y = jax.lax.conv_general_dilated(
        x_nchw, conv_w, window_strides=(1, 1), padding="SAME",
        dimension_numbers=("NCHW", "OIHW", "NCHW"))
    y = y + conv_b.reshape(1, -1, 1, 1)
    return y.mean(axis=(2, 3))                                # wrapper's mean([2,3])


if __name__ == "__main__":
    B, Cin, H, W = 2, 4, 16, 16
    Cout, KH, KW = 32, 3, 3

    key = jax.random.PRNGKey(0)
    kx, kw_, kb = jax.random.split(key, 3)
    x = jax.random.normal(kx, (B, Cin, H, W), dtype=jnp.float32)
    conv_w = (jax.random.normal(kw_, (Cout, Cin, KH, KW), dtype=jnp.float32)
              * (1.0 / (Cin * KH * KW) ** 0.5))
    conv_b = jax.random.normal(kb, (Cout,), dtype=jnp.float32) * 0.01

    fwd = jax.jit(backbone_wrapper_forward)
    out = fwd(x, conv_w, conv_b)
    out = jax.block_until_ready(out)

    ref = _reference(x, conv_w, conv_b)
    assert out.shape == (B, Cout)
    assert jnp.allclose(out, ref, atol=1e-4, rtol=1e-4), (
        float(jnp.max(jnp.abs(out - ref))))

    print("KERNEL_OK")
</pallas_src>

<mosaic_0001>
module attributes {stable_mosaic.version = 11 : i64} {
  func.func @_conv_meanpool_kernel(%arg0: i32, %arg1: memref<1x4x16x16xf32, #tpu.memory_space<vmem>>, %arg2: memref<3x3x4x32xf32, #tpu.memory_space<vmem>>, %arg3: memref<1x32xf32, #tpu.memory_space<vmem>>, %arg4: memref<1x1x32xf32, #tpu.memory_space<vmem>>) attributes {dimension_semantics = [#tpu.dimension_semantics<parallel>], iteration_bounds = array<i64: 2>, scalar_prefetch = 0 : i64, scratch_operands = 0 : i64, tpu.core_type = #tpu.core_type<tc>, window_params = [{transform_indices = @transform_0, window_bounds = array<i64: 1, 4, 16, 16>}, {pipeline_mode = #tpu.pipeline_mode<synchronous>, transform_indices = @transform_1, window_bounds = array<i64: 3, 3, 4, 32>}, {pipeline_mode = #tpu.pipeline_mode<synchronous>, transform_indices = @transform_2, window_bounds = array<i64: 1, 32>}, {transform_indices = @transform_3, window_bounds = array<i64: 1, 1, 32>}]} {
    %c0 = arith.constant 0 : index
    %c0_0 = arith.constant 0 : index
    %c0_1 = arith.constant 0 : index
    %c0_2 = arith.constant 0 : index
    %0 = vector.load %arg1[%c0, %c0_0, %c0_1, %c0_2] : memref<1x4x16x16xf32, #tpu.memory_space<vmem>>, vector<1x4x16x16xf32>
    %1 = vector.shape_cast %0 : vector<1x4x16x16xf32> to vector<4x16x16xf32>
    %cst = arith.constant dense<0.000000e+00> : vector<4x16xf32>
    %2 = vector.multi_reduction <add>, %1, %cst [1] : vector<4x16x16xf32> to vector<4x16xf32>
    %cst_3 = arith.constant 0.000000e+00 : f32
    %3 = vector.broadcast %cst_3 : f32 to vector<4x32xf32>
    %4 = vector.extract_strided_slice %1 {offsets = [0, 15, 0], sizes = [4, 1, 16], strides = [1, 1, 1]} : vector<4x16x16xf32> to vector<4x1x16xf32>
    %cst_4 = arith.constant dense<0.000000e+00> : vector<4x16xf32>
    %5 = vector.multi_reduction <add>, %4, %cst_4 [1] : vector<4x1x16xf32> to vector<4x16xf32>
    %6 = arith.subf %2, %5 : vector<4x16xf32>
    %cst_5 = arith.constant dense<0.000000e+00> : vector<4xf32>
    %7 = vector.multi_reduction <add>, %6, %cst_5 [1] : vector<4x16xf32> to vector<4xf32>
    %8 = vector.shape_cast %7 : vector<4xf32> to vector<4x1xf32>
    %9 = vector.extract_strided_slice %6 {offsets = [0, 15], sizes = [4, 1], strides = [1, 1]} : vector<4x16xf32> to vector<4x1xf32>
    %cst_6 = arith.constant dense<0.000000e+00> : vector<4xf32>
    %10 = vector.multi_reduction <add>, %9, %cst_6 [1] : vector<4x1xf32> to vector<4xf32>
    %11 = vector.shape_cast %10 : vector<4xf32> to vector<4x1xf32>
    %12 = arith.subf %8, %11 : vector<4x1xf32>
    %c0_7 = arith.constant 0 : index
    %c0_8 = arith.constant 0 : index
    %c0_9 = arith.constant 0 : index
    %c0_10 = arith.constant 0 : index
    %13 = vector.load %arg2[%c0_7, %c0_8, %c0_9, %c0_10] : memref<3x3x4x32xf32, #tpu.memory_space<vmem>>, vector<1x1x4x32xf32>
    %14 = vector.shape_cast %13 : vector<1x1x4x32xf32> to vector<4x32xf32>
    %15 = vector.broadcast %12 : vector<4x1xf32> to vector<4x32xf32>
    %16 = arith.mulf %15, %14 : vector<4x32xf32>
    %17 = arith.addf %3, %16 : vector<4x32xf32>
    %c0_11 = arith.constant 0 : index
    %c1 = arith.constant 1 : index
    %c0_12 = arith.constant 0 : index
    %c0_13 = arith.constant 0 : index
    %18 = vector.load %arg2[%c0_11, %c1, %c0_12, %c0_13] : memref<3x3x4x32xf32, #tpu.memory_space<vmem>>, vector<1x1x4x32xf32>
    %19 = vector.shape_cast %18 : vector<1x1x4x32xf32> to vector<4x32xf32>
    %20 = vector.broadcast %8 : vector<4x1xf32> to vector<4x32xf32>
    %21 = arith.mulf %20, %19 : vector<4x32xf32>
    %22 = arith.addf %17, %21 : vector<4x32xf32>
    %23 = vector.extract_strided_slice %6 {offsets = [0, 0], sizes = [4, 1], strides = [1, 1]} : vector<4x16xf32> to vector<4x1xf32>
    %cst_14 = arith.constant dense<0.000000e+00> : vector<4xf32>
    %24 = vector.multi_reduction <add>, %23, %cst_14 [1] : vector<4x1xf32> to vector<4xf32>
    %25 = vector.shape_cast %24 : vector<4xf32> to vector<4x1xf32>
    %26 = arith.subf %8, %25 : vector<4x1xf32>
    %c0_15 = arith.constant 0 : index
    %c2 = arith.constant 2 : index
    %c0_16 = arith.constant 0 : index
    %c0_17 = arith.constant 0 : index
    %27 = vector.load %arg2[%c0_15, %c2, %c0_16, %c0_17] : memref<3x3x4x32xf32, #tpu.memory_space<vmem>>, vector<1x1x4x32xf32>
    %28 = vector.shape_cast %27 : vector<1x1x4x32xf32> to vector<4x32xf32>
    %29 = vector.broadcast %26 : vector<4x1xf32> to vector<4x32xf32>
    %30 = arith.mulf %29, %28 : vector<4x32xf32>
    %31 = arith.addf %22, %30 : vector<4x32xf32>
    %cst_18 = arith.constant dense<0.000000e+00> : vector<4xf32>
    %32 = vector.multi_reduction <add>, %2, %cst_18 [1] : vector<4x16xf32> to vector<4xf32>
    %33 = vector.shape_cast %32 : vector<4xf32> to vector<4x1xf32>
    %34 = vector.extract_strided_slice %2 {offsets = [0, 15], sizes = [4, 1], strides = [1, 1]} : vector<4x16xf32> to vector<4x1xf32>
    %cst_19 = arith.constant dense<0.000000e+00> : vector<4xf32>
    %35 = vector.multi_reduction <add>, %34, %cst_19 [1] : vector<4x1xf32> to vector<4xf32>
    %36 = vector.shape_cast %35 : vector<4xf32> to vector<4x1xf32>
    %37 = arith.subf %33, %36 : vector<4x1xf32>
    %c1_20 = arith.constant 1 : index
    %c0_21 = arith.constant 0 : index
    %c0_22 = arith.constant 0 : index
    %c0_23 = arith.constant 0 : index
    %38 = vector.load %arg2[%c1_20, %c0_21, %c0_22, %c0_23] : memref<3x3x4x32xf32, #tpu.memory_space<vmem>>, vector<1x1x4x32xf32>
    %39 = vector.shape_cast %38 : vector<1x1x4x32xf32> to vector<4x32xf32>
    %40 = vector.broadcast %37 : vector<4x1xf32> to vector<4x32xf32>
    %41 = arith.mulf %40, %39 : vector<4x32xf32>
    %42 = arith.addf %31, %41 : vector<4x32xf32>
    %c1_24 = arith.constant 1 : index
    %c1_25 = arith.constant 1 : index
    %c0_26 = arith.constant 0 : index
    %c0_27 = arith.constant 0 : index
    %43 = vector.load %arg2[%c1_24, %c1_25, %c0_26, %c0_27] : memref<3x3x4x32xf32, #tpu.memory_space<vmem>>, vector<1x1x4x32xf32>
    %44 = vector.shape_cast %43 : vector<1x1x4x32xf32> to vector<4x32xf32>
    %45 = vector.broadcast %33 : vector<4x1xf32> to vector<4x32xf32>
    %46 = arith.mulf %45, %44 : vector<4x32xf32>
    %47 = arith.addf %42, %46 : vector<4x32xf32>
    %48 = vector.extract_strided_slice %2 {offsets = [0, 0], sizes = [4, 1], strides = [1, 1]} : vector<4x16xf32> to vector<4x1xf32>
    %cst_28 = arith.constant dense<0.000000e+00> : vector<4xf32>
    %49 = vector.multi_reduction <add>, %48, %cst_28 [1] : vector<4x1xf32> to vector<4xf32>
    %50 = vector.shape_cast %49 : vector<4xf32> to vector<4x1xf32>
    %51 = arith.subf %33, %50 : vector<4x1xf32>
    %c1_29 = arith.constant 1 : index
    %c2_30 = arith.constant 2 : index
    %c0_31 = arith.constant 0 : index
    %c0_32 = arith.constant 0 : index
    %52 = vector.load %arg2[%c1_29, %c2_30, %c0_31, %c0_32] : memref<3x3x4x32xf32, #tpu.memory_space<vmem>>, vector<1x1x4x32xf32>
    %53 = vector.shape_cast %52 : vector<1x1x4x32xf32> to vector<4x32xf32>
    %54 = vector.broadcast %51 : vector<4x1xf32> to vector<4x32xf32>
    %55 = arith.mulf %54, %53 : vector<4x32xf32>
    %56 = arith.addf %47, %55 : vector<4x32xf32>
    %57 = vector.extract_strided_slice %1 {offsets = [0, 0, 0], sizes = [4, 1, 16], strides = [1, 1, 1]} : vector<4x16x16xf32> to vector<4x1x16xf32>
    %cst_33 = arith.constant dense<0.000000e+00> : vector<4x16xf32>
    %58 = vector.multi_reduction <add>, %57, %cst_33 [1] : vector<4x1x16xf32> to vector<4x16xf32>
    %59 = arith.subf %2, %58 : vector<4x16xf32>
    %cst_34 = arith.constant dense<0.000000e+00> : vector<4xf32>
    %60 = vector.multi_reduction <add>, %59, %cst_34 [1] : vector<4x16xf32> to vector<4xf32>
    %61 = vector.shape_cast %60 : vector<4xf32> to vector<4x1xf32>
    %62 = vector.extract_strided_slice %59 {offsets = [0, 15], sizes = [4, 1], strides = [1, 1]} : vector<4x16xf32> to vector<4x1xf32>
    %cst_35 = arith.constant dense<0.000000e+00> : vector<4xf32>
    %63 = vector.multi_reduction <add>, %62, %cst_35 [1] : vector<4x1xf32> to vector<4xf32>
    %64 = vector.shape_cast %63 : vector<4xf32> to vector<4x1xf32>
    %65 = arith.subf %61, %64 : vector<4x1xf32>
    %c2_36 = arith.constant 2 : index
    %c0_37 = arith.constant 0 : index
    %c0_38 = arith.constant 0 : index
    %c0_39 = arith.constant 0 : index
    %66 = vector.load %arg2[%c2_36, %c0_37, %c0_38, %c0_39] : memref<3x3x4x32xf32, #tpu.memory_space<vmem>>, vector<1x1x4x32xf32>
    %67 = vector.shape_cast %66 : vector<1x1x4x32xf32> to vector<4x32xf32>
    %68 = vector.broadcast %65 : vector<4x1xf32> to vector<4x32xf32>
    %69 = arith.mulf %68, %67 : vector<4x32xf32>
    %70 = arith.addf %56, %69 : vector<4x32xf32>
    %c2_40 = arith.constant 2 : index
    %c1_41 = arith.constant 1 : index
    %c0_42 = arith.constant 0 : index
    %c0_43 = arith.constant 0 : index
    %71 = vector.load %arg2[%c2_40, %c1_41, %c0_42, %c0_43] : memref<3x3x4x32xf32, #tpu.memory_space<vmem>>, vector<1x1x4x32xf32>
    %72 = vector.shape_cast %71 : vector<1x1x4x32xf32> to vector<4x32xf32>
    %73 = vector.broadcast %61 : vector<4x1xf32> to vector<4x32xf32>
    %74 = arith.mulf %73, %72 : vector<4x32xf32>
    %75 = arith.addf %70, %74 : vector<4x32xf32>
    %76 = vector.extract_strided_slice %59 {offsets = [0, 0], sizes = [4, 1], strides = [1, 1]} : vector<4x16xf32> to vector<4x1xf32>
    %cst_44 = arith.constant dense<0.000000e+00> : vector<4xf32>
    %77 = vector.multi_reduction <add>, %76, %cst_44 [1] : vector<4x1xf32> to vector<4xf32>
    %78 = vector.shape_cast %77 : vector<4xf32> to vector<4x1xf32>
    %79 = arith.subf %61, %78 : vector<4x1xf32>
    %c2_45 = arith.constant 2 : index
    %c2_46 = arith.constant 2 : index
    %c0_47 = arith.constant 0 : index
    %c0_48 = arith.constant 0 : index
    %80 = vector.load %arg2[%c2_45, %c2_46, %c0_47, %c0_48] : memref<3x3x4x32xf32, #tpu.memory_space<vmem>>, vector<1x1x4x32xf32>
    %81 = vector.shape_cast %80 : vector<1x1x4x32xf32> to vector<4x32xf32>
    %82 = vector.broadcast %79 : vector<4x1xf32> to vector<4x32xf32>
    %83 = arith.mulf %82, %81 : vector<4x32xf32>
    %84 = arith.addf %75, %83 : vector<4x32xf32>
    %cst_49 = arith.constant dense<0.000000e+00> : vector<32xf32>
    %85 = vector.multi_reduction <add>, %84, %cst_49 [0] : vector<4x32xf32> to vector<32xf32>
    %86 = vector.shape_cast %85 : vector<32xf32> to vector<1x32xf32>
    %cst_50 = arith.constant 3.906250e-03 : f32
    %87 = vector.broadcast %cst_50 : f32 to vector<1x32xf32>
    %88 = arith.mulf %86, %87 : vector<1x32xf32>
    %c0_51 = arith.constant 0 : index
    %c0_52 = arith.constant 0 : index
    %89 = vector.load %arg3[%c0_51, %c0_52] : memref<1x32xf32, #tpu.memory_space<vmem>>, vector<1x32xf32>
    %90 = arith.addf %88, %89 : vector<1x32xf32>
    %c0_53 = arith.constant 0 : index
    %c0_54 = arith.constant 0 : index
    %c0_55 = arith.constant 0 : index
    %91 = vector.load %arg4[%c0_53, %c0_54, %c0_55] : memref<1x1x32xf32, #tpu.memory_space<vmem>>, vector<1x1x32xf32>
    %92 = vector.shape_cast %91 : vector<1x1x32xf32> to vector<1x32xf32>
    %93 = vector.shape_cast %90 : vector<1x32xf32> to vector<1x1x32xf32>
    tpu.vector_store %arg4[%c0_53, %c0_54, %c0_55], %93 {strides = array<i32>} : memref<1x1x32xf32, #tpu.memory_space<vmem>>, vector<1x1x32xf32>,
    return
  }
  func.func @transform_0(%arg0: i32) -> (i32, i32, i32, i32) {
    %c0_i32 = arith.constant 0 : i32
    %c0_i32_0 = arith.constant 0 : i32
    %c0_i32_1 = arith.constant 0 : i32
    %c0_i32_2 = arith.constant 0 : i32
    return %arg0, %c0_i32, %c0_i32_0, %c0_i32_1 : i32, i32, i32, i32
  }
  func.func @transform_1(%arg0: i32) -> (i32, i32, i32, i32) {
    %c0_i32 = arith.constant 0 : i32
    %c0_i32_0 = arith.constant 0 : i32
    %c0_i32_1 = arith.constant 0 : i32
    %c0_i32_2 = arith.constant 0 : i32
    %c0_i32_3 = arith.constant 0 : i32
    return %c0_i32, %c0_i32_0, %c0_i32_1, %c0_i32_2 : i32, i32, i32, i32
  }
  func.func @transform_2(%arg0: i32) -> (i32, i32) {
    %c0_i32 = arith.constant 0 : i32
    %c0_i32_0 = arith.constant 0 : i32
    %c0_i32_1 = arith.constant 0 : i32
    return %c0_i32, %c0_i32_0 : i32, i32
  }
  func.func @transform_3(%arg0: i32) -> (i32, i32, i32) {
    %c0_i32 = arith.constant 0 : i32
    %c0_i32_0 = arith.constant 0 : i32
    %c0_i32_1 = arith.constant 0 : i32
    return %arg0, %c0_i32, %c0_i32_0 : i32, i32, i32
  }
}

</mosaic_0001>

<bundles_post_ra>
// kernel: backbone_wrapper_forward.1
= control target key start
LH: loop header
LB: loop body
LE: loop exit
PB: predicated region body
PF: predicated region fallthrough
CT: control target
= control target key end

     0   :  { %8 = vsyncpa [#allocation3], 0  ;;  %s1015_s0 = inlined_call_operand.hbm [shape: f32[2,4,16,16], index: 0, kind: input, shape index: {}]   ;;  %s1016_s1 = inlined_call_operand.hbm [shape: f32[3,3,4,32], index: 1, kind: input, shape index: {}]   ;;  %s1017_s2 = inlined_call_operand.vmem [shape: f32[1,32], index: 2, kind: input, shape index: {}]   ;;  %s1018_s3 = inlined_call_operand.hbm [shape: f32[2,1,32], index: 3, kind: output, shape index: {}]  }
   0x1   :  { %10 = vsyncpa [#allocation3 + $0x1], 0 }
   0x2   :  { %11 = vsyncpa [#allocation6], 0 }
   0x3   :  { %12 = vsyncpa [#allocation4], 0 }
   0x4   :  { %14 = vsyncpa [#allocation4 + $0x1], 0  ;;  %s839_s12 = smov 0   ;;  %s841_s13 = smov 0  }
   0x5   :  { %s843_s14 = smov 0   ;;  %s845_s15 = smov 0  }
   0x6 LB: > { %s860_s16 = sadd.s32 4294967295, %s810_s15   ;;  %s601_s17 = sadd.s32 4294967294, %s810_s15   ;;  %s810_s15 = sphi %s845_s15, %s1028_s15   ;;  %s806_s14 = sphi %s843_s14, %s1027_s14   ;;  %s802_s13 = sphi %s841_s13, %s1026_s13   ;;  %s798_s12 = sphi %s839_s12, %s1025_s12  }
   0x7   : > { %p40_p0 = scmp.ne.s32.totalorder %s802_s13, %s798_s12  ;;  %p41_p1 = scmp.eq.s32.totalorder %s860_s16, 0 }
   0x8   : > { %p106_p2 = scmp.eq.s32.totalorder %s860_s16, 1  ;;  %p112_p3 = scmp.eq.s32.totalorder %s601_s17, 1 }
   0x9   : > { %p869_p4 = por %p41_p1, %p40_p0  ;;  %p602_p5 = scmp.ge.s32.totalorder %s810_s15, 1 }
   0xa   : > { %p874_p6 = por %p112_p3, %p40_p0  ;;  %p119_p7 = scmp.lt.s32.totalorder %s810_s15, 3 }
   0xb   : > { %s130_s22 = sshll.u32 %s1016_s1, 4  ;;  %s812_s24 = smov [#allocation5]   ;;  %s131_s22 = int_to_ptr.hbm [resolvable:$true] %s130_s22 }
   0xc   : > { %p882_p8 = pnand %p602_p5, %p119_p7  ;;  %s132_s25 = sshll.u32 %s812_s24, 4  ;;  %s133_s25 = int_to_ptr.vmem [resolvable:$true] %s132_s25 }
   0xd   : > { %s892_s26 = sadd.s32 1, %s810_s15   ;;  %s813_s27 = smov 64  }
   0xe   : > { %p622_p9 = pneg %p882_p8  ;;  %s814_s28 = smov 4  }
   0xf   : > { %s24_s29 = ssub.s32 %s810_s15, %s892_s26  ;;  %s27_s30 = sadd.s32 1, %s806_s14 }
  0x10   : > { %p623_p10 = pnand %p622_p9, %p41_p1  ;;  %p25_p12 = scmp.eq.s32.totalorder %s24_s29, 0 }
  0x11   : > { %p34_p13 = scmp.ne.s32.totalorder %s806_s14, %s802_s13  ;;  %p35_p0 = scmp.eq.s32.totalorder %s810_s15, 0 }
  0x12   : > { %625 = dma.hbm_to_vmem [thread:$0]  (!%p623_p10), %s131_s22, 576, %s133_s25, [#allocation6], %s813_s27, %s813_s27, %s814_s28  }
  0x13   : > { %p635_p3 = scmp.lt.s32.totalorder %s810_s15, 2  ;;  %p36_p5 = por %p35_p0, %p34_p13 }
  0x14   : > { %s902_s4 = scalar_select %p25_p12, %s806_s14, %s27_s30  }
  0x15   : > { %p906_p7 = por %p106_p2, %p34_p13  ;;  %s149_s6 = sand.u32 1, %s806_s14  }
  0x16   : > { %s613_s7 = sshll.u32 %s810_s15, 6  ;;  %s605_s8 = sshll.u32 %s149_s6, 6 }
  0x17   : > { %s158_s11 = scalar_lea.hbm %s1015_s0, %s613_s7  ;;  %s153_s20 = scalar_lea.vmem [#allocation2], %s605_s8 }
  0x18   : > { %s159_s17 = sshll.u32 %s158_s11, 4  ;;  %s161_s21 = sshll.u32 %s153_s20, 4  ;;  %s160_s17 = int_to_ptr.hbm [resolvable:$true] %s159_s17  ;;  %s162_s21 = int_to_ptr.vmem [resolvable:$true] %s161_s21 }
  0x19   : > { %p917_p9 = pnand %p635_p3, %p36_p5  ;;  %s150_s24 = scalar_lea.sflag [#allocation3], %s149_s6 }
  0x1a   : > { %s710_s25 = sshra.s32 %s160_s17, 4  ;;  %s717_s30 = scalar_lea.hbm %s1015_s0, 128  ;;  %s711_s25 = int_to_ptr.hbm [resolvable:$true] %s710_s25 }
  0x1b   : > { %s712_s27 = scalar_lea.hbm %s711_s25, 64  ;;  %p714_p10 = pneg %p917_p9 }
  0x1c   : > { %p713_p2 = scmp.ne.s32.totalorder %s711_s25, %s712_s27  ;;  %p718_p0 = scmp.lt.s32.totalorder %s711_s25, %s1015_s0 }
  0x1d   : > { %p719_p3 = scmp.lt.s32.totalorder %s717_s30, %s712_s27 }
  0x1e   : > { %p715_p12 = pnand %p714_p10, %p713_p2 }
  0x1f   : > { %p720_p5 = por %p719_p3, %p718_p0 }
  0x20   : > { %p716_p13 = pneg %p715_p12 }
  0x22   : > { %p721_p11 = pnand %p720_p5, %p716_p13 }
  0x24   : > { %724 = shalt.err (!%p721_p11)
}
  0x25   : > { %s815_s6 = smov 128   ;;  %s816_s9 = smov 8  }
  0x26   : > { %629 = dma.hbm_to_vmem [thread:$0]  (!%p917_p9), %s160_s17, 1024, %s162_s21, %s150_s24, %s815_s6, %s815_s6, %s816_s9  }
  0x27   : > { %173 = sbr.rel (%p882_p8) target bundleno = 390 (0x186), region = 32  ;;  %s934_s10 = sand.u32 (!%p882_p8), 1, %s802_s13  }
  0x28   : > { %s609_s11 = sshll.u32 (!%p882_p8), %s934_s10, 6  ;;  %s176_s20 = scalar_lea.sflag (!%p882_p8), [#allocation3], %s934_s10 }
  0x29   : > { %s179_s25 = scalar_lea.vmem (!%p882_p8), [#allocation2], %s609_s11 }
  0x2c   : > { %785 = dma.done.wait (%p869_p4), %s176_s20, 1024  }
  0x2d   : > { %787 = vsyncadd (%p869_p4), %s176_s20, 4294966272 }
  0x2e   : > { %789 = dma.done.wait (%p41_p1), [#allocation6], 576  }
  0x2f   : > { %791 = vsyncadd (%p41_p1), [#allocation6], 4294966720  ;;  %vm215_vm0 = vcmask 130048   ;;  %v946_v0 = vld [vmem:[%s179_s25] sm:$0xff]  ;;  %v208_v1 = vld [vmem:[%s179_s25 + $0x8] sm:$0xff]  ;;  %vm266_vm1 = vcmask 1041409   ;;  %s521_s21 = scalar_lea.hbm %s1018_s3, %s860_s16 }
  0x30   : > { %v948_v2 = vld [vmem:[%s179_s25 + $0x10] sm:$0xff]  ;;  %v210_v3 = vld [vmem:[%s179_s25 + $0x18] sm:$0xff]  ;;  %v950_v4 = vld [vmem:[%s179_s25 + $0x20] sm:$0xff]  ;;  %v216_v6 = vsel %vm215_vm0, %v946_v0, 0.0  ;;  %v217_v7 = vsel %vm215_vm0, %v208_v1, 0.0  ;;  %vm269_vm2 = vcmask 1042434  }
  0x31   : > { %v212_v5 = vld [vmem:[%s179_s25 + $0x28] sm:$0xff]  ;;  %v225_v8 = vsel %vm215_vm0, %v948_v2, 0.0  ;;  %v957_v9 = vld [vmem:[%s179_s25 + $0x30] sm:$0xff]  ;;  %v214_v10 = vld [vmem:[%s179_s25 + $0x38] sm:$0xff]  ;;  %v218_v11 = vadd.f32 %v217_v7, %v216_v6  ;;  %v226_v12 = vsel %vm215_vm0, %v210_v3, 0.0  ;;  %v234_v13 = vsel %vm215_vm0, %v950_v4, 0.0 }
  0x32   : > { %v235_v14 = vsel %vm215_vm0, %v212_v5, 0.0  ;;  %v227_v15 = vadd.f32 %v226_v12, %v225_v8  ;;  %v243_v17 = vsel %vm215_vm0, %v957_v9, 0.0  ;;  %v244_v18 = vsel %vm215_vm0, %v214_v10, 0.0  ;;  %s817_s18 = smov 113   ;;  %s206_s27 = scalar_lea.vmem [#allocation7], %s934_s10 }
  0x33   : > { %v236_v16 = vadd.f32 %v235_v14, %v234_v13  ;;  %v219_v19 = vrot.slane %v218_v11, 4  ;;  %v245_v20 = vadd.f32 %v244_v18, %v243_v17  ;;  %vm273_vm3 = vcmask 130055   ;;  %s523_s28 = sshll.u32 %s206_s27, 4  ;;  %s525_s29 = sshll.u32 %s521_s21, 4  ;;  %s524_s28 = int_to_ptr.vmem [resolvable:$true] %s523_s28  ;;  %s526_s29 = int_to_ptr.hbm [resolvable:$true] %s525_s29 }
  0x34   : > { %v228_v21 = vrot.slane %v227_v15, 4  ;;  %vm358_vm4 = vcmask 1043459   ;;  %vm277_vm5 = vcmask 124928   ;;  %vm361_vm6 = vcmask 125952   ;;  %s513_s30 = scalar_lea.sflag [#allocation4], %s934_s10  ;;  %s754_s7 = sshra.s32 %s526_s29, 4  ;;  %s755_s7 = int_to_ptr.hbm [resolvable:$true] %s754_s7 }
  0x35   : > { %v237_v22 = vrot.slane %v236_v16, 4  ;;  %v220_v23 = vadd.f32 %v219_v19, %v218_v11  ;;  %v246_v24 = vrot.slane %v245_v20, 4  ;;  %vm494_vm7 = vcmask 1040384   ;;  %s756_s8 = scalar_lea.hbm %s755_s7, 1  ;;  %s760_s9 = scalar_lea.hbm %s1018_s3, 2 }
  0x36   : > { %v229_v25 = vadd.f32 %v228_v21, %v227_v15  ;;  %vm499_vm8 = vcmask 257024   ;;  %vm510_vm9 = vcmask 253952   ;;  %p757_p1 = scmp.ne.s32.totalorder %s755_s7, %s756_s8  ;;  %p761_p11 = scmp.lt.s32.totalorder %s755_s7, %s1018_s3 }
  0x37   : > { %v238_v26 = vadd.f32 %v237_v22, %v236_v16  ;;  %v221_v27 = vrot.slane %v220_v23, 2  ;;  %v247_v28 = vadd.f32 %v246_v24, %v245_v20  ;;  %v321_v24 = vld [vmem:[#allocation5 + $0x4] sm:$0xf]  ;;  %p762_p9 = scmp.lt.s32.totalorder %s760_s9, %s756_s8 }
  0x38   : > { %v230_v29 = vrot.slane %v229_v25, 2  ;;  %p758_p4 = pnand %p757_p1, %p906_p7 }
  0x39   : > { %v239_v30 = vrot.slane %v238_v26, 2  ;;  %v222_v31 = vadd.f32 %v221_v27, %v220_v23  ;;  %v248_v32 = vrot.slane %v247_v28, 2  ;;  %v302_v23 = vld [vmem:[#allocation5] sm:$0xf]  ;;  %v334_v27 = vld [vmem:[#allocation5 + $0x8] sm:$0xf]  ;;  %p763_p2 = por %p762_p9, %p761_p11 }
  0x3a   : > { %v231_v33 = vadd.f32 %v230_v29, %v229_v25  ;;  %v314_v25 = vrot.slane %v302_v23, 1  ;;  %v323_v29 = vrot.slane %v321_v24, 1  ;;  %v508_v23 = vld [vmem:[%s1017_s2] sm:$0x1]  ;;  %p759_p8 = pneg %p758_p4 }
  0x3b   : > { %v240_v34 = vadd.f32 %v239_v30, %v238_v26  ;;  %v223_v35 = vrot.slane %v222_v31, 1  ;;  %v249_v36 = vadd.f32 %v248_v32, %v247_v28 }
  0x3c   : > { %v232_v37 = vrot.slane %v231_v33, 1  ;;  %p764_p10 = pnand %p763_p2, %p759_p8 }
  0x3d   : > { %v241_v38 = vrot.slane %v240_v34, 1  ;;  %v224_v39 = vadd.f32 %v223_v35, %v222_v31  ;;  %v250_v40 = vrot.slane %v249_v36, 1  ;;  %v346_v31 = vrot.slane %v334_v27, 1  ;;  %v381_v35 = vld [vmem:[#allocation5 + $0xc] sm:$0xf] }
  0x3e   : > { %v233_v41 = vadd.f32 %v232_v37, %v231_v33  ;;  %v394_v33 = vld [vmem:[#allocation5 + $0x10] sm:$0xf] }
  0x3f   : > { %v242_v42 = vadd.f32 %v241_v38, %v240_v34  ;;  %v251_v43 = vadd.f32 %v250_v40, %v249_v36  ;;  %v256_v44 = vsub.f32 %v224_v39, %v208_v1  ;;  %v420_v58 = vsub.f32 %v224_v39, %v946_v0 }
  0x40   : > { %v356_v45 = vsel %vm266_vm1, %v233_v41, %v224_v39  ;;  %v257_v46 = vsub.f32 %v233_v41, %v210_v3  ;;  %v421_v59 = vsub.f32 %v233_v41, %v948_v2  ;;  %v818_v2 = vmov 0  }
  0x41   : > { %v258_v47 = vsub.f32 %v242_v42, %v212_v5  ;;  %v357_v48 = vsel %vm269_vm2, %v242_v42, %v356_v45  ;;  %v274_v49 = vsel %vm273_vm3, %v256_v44, 0.0  ;;  %294 = vrot.lane.b32.xlu1 %v256_v44, %s817_s18  ;;  %v259_v50 = vsub.f32 %v251_v43, %v214_v10  ;;  %677 = vset.pattern.permute.xlu0 %v818_v2 }
  0x42   : > { %v359_v51 = vsel %vm358_vm4, %v251_v43, %v357_v48  ;;  %275 = vadd.xlane.f32.xlu0 %v274_v49  ;;  %v264_v52 = vrot.slane %v257_v46, 7  ;;  %v422_v60 = vsub.f32 %v242_v42, %v950_v4  ;;  %v423_v61 = vsub.f32 %v251_v43, %v957_v9  ;;  %678 = vset.pattern.permute.xlu1 %v818_v2 }
  0x43   : > { %v265_v53 = vrot.slane %v258_v47, 6  ;;  %376 = vrot.lane.b32.xlu2 %v359_v51, %s817_s18  ;;  %v268_v54 = vrot.slane %v259_v50, 5  ;;  %v428_v62 = vrot.slane %v421_v59, 7  ;;  %v362_v0 = vsel %vm361_vm6, %v359_v51, 0.0  ;;  %v404_v50 = vld [vmem:[#allocation5 + $0x14] sm:$0xf] }
  0x44   : > { %v430_v63 = vrot.slane %v422_v60, 6  ;;  %v432_v1 = vrot.slane %v423_v61, 5  ;;  %679 = vset.pattern.permute.xlu2 %v818_v2 }
  0x45   : > { %v267_v55 = vsel %vm266_vm1, %v265_v53, %v264_v52  ;;  %v429_v3 = vsel %vm266_vm1, %v428_v62, %v420_v58  ;;  %v480_v58 = vld [vmem:[#allocation5 + $0x20] sm:$0xf] }
  0x46   : > { %v270_v56 = vsel %vm269_vm2, %v268_v54, %v267_v55  ;;  %v431_v5 = vsel %vm269_vm2, %v430_v63, %v429_v3  ;;  %v470_v55 = vld [vmem:[#allocation5 + $0x1c] sm:$0xf] }
  0x47   : > { %v278_v57 = vsel %vm277_vm5, %v270_v56, 0.0  ;;  %v433_v6 = vsel %vm358_vm4, %v432_v1, %v431_v5 }
  0x48   : > { %v435_v7 = vsel %vm361_vm6, %v433_v6, 0.0 }
  0x49   : > { %296 = vrot.lane.b32.xlu1 %v270_v56, %s817_s18 }
  0x4a   : > { %279 = vadd.xlane.f32.xlu0 %v278_v57 }
  0x51   : > { %452 = vrot.lane.b32.xlu1 %v433_v6, %s817_s18 }
  0x52   : > { %436 = vadd.xlane.f32.xlu0 %v435_v7 }
  0x6c   : > { %363 = vadd.xlane.f32.xlu2 %v362_v0 }
  0x9d   : > { %v377_v13 = vpop.permute.xlu2 %376 }
  0xb3   : > { %v295_v4 = vpop.permute.xlu1 %294 }
  0xb5   : > { %v276_v8 = vpop.xlane.xlu0 %275 }
  0xb6   : > { %v300_v9 = vsub.f32 %v276_v8, %v295_v4  ;;  %v331_v10 = vsub.f32 %v276_v8, %v256_v44  ;;  %v325_v32 = vmul.f32 %v323_v29, %v276_v8 }
  0xb8   : > { %305 = vperm.xlu0 %677, %v300_v9   ;;  %337 = vperm.xlu1 %678, %v331_v10  }
  0xbb   : > { %v297_v17 = vpop.permute.xlu1 %296 }
  0xbd   : > { %v280_v11 = vpop.xlane.xlu0 %279 }
  0xbe   : > { %v332_v12 = vsub.f32 %v280_v11, %v270_v56  ;;  %v301_v19 = vsub.f32 %v280_v11, %v297_v17  ;;  %v326_v48 = vmul.f32 %v323_v29, %v280_v11  ;;  %v457_v56 = vld [vmem:[#allocation5 + $0x18] sm:$0xf] }
  0xc0   : > { %342 = vperm.xlu2 %679, %v332_v12  }
  0xc3   : > { %v453_v21 = vpop.permute.xlu1 %452 }
  0xc5   : > { %v437_v18 = vpop.xlane.xlu0 %436 }
  0xc6   : > { %v478_v20 = vsub.f32 %v437_v18, %v433_v6  ;;  %v455_v22 = vsub.f32 %v437_v18, %v453_v21  ;;  %v471_v61 = vmul.f32 %v470_v55, %v437_v18 }
  0xc8   : > { %v473_v0 = vrot.slane %v471_v61, 1 }
  0xdf   : > { %v364_v14 = vpop.xlane.xlu2 %363 }
  0xe0   : > { %v379_v15 = vsub.f32 %v364_v14, %v377_v13  ;;  %v402_v16 = vsub.f32 %v364_v14, %v359_v51  ;;  %v395_v39 = vmul.f32 %v394_v33, %v364_v14 }
  0xe2   : > { %384 = vperm.xlu1 %678, %v379_v15   ;;  %407 = vperm.xlu2 %679, %v402_v16   ;;  %v397_v43 = vrot.slane %v395_v39, 1 }
  0xea   : > { %310 = vperm.xlu1 %678, %v301_v19   ;;  %483 = vperm.xlu2 %679, %v478_v20  }
  0xf2   : > { %460 = vperm.xlu1 %678, %v455_v22  }
 0x11a   : > { %v343_v34 = vpop.permute.xlu2 %342 }
 0x11b   : > { %v349_v51 = vmul.f32 %v346_v31, %v343_v34 }
 0x12a   : > { %v306_v26 = vpop.permute.xlu0 %305  ;;  %v338_v28 = vpop.permute.xlu1 %337 }
 0x12b   : > { %v316_v30 = vmul.f32 %v314_v25, %v306_v26  ;;  %v348_v37 = vmul.f32 %v346_v31, %v338_v28 }
 0x12d   : > { %v327_v36 = vadd.f32 %v325_v32, %v316_v30 }
 0x12f   : > { %v350_v41 = vadd.f32 %v348_v37, %v327_v36 }
 0x13c   : > { %v408_v46 = vpop.permute.xlu2 %407 }
 0x13d   : > { %v410_v53 = vmul.f32 %v408_v46, %v404_v50 }
 0x13f   : > { %v412_v62 = vrot.slane %v410_v53, 1 }
 0x144   : > { %v484_v59 = vpop.permute.xlu2 %483 }
 0x145   : > { %v486_v3 = vmul.f32 %v484_v59, %v480_v58 }
 0x147   : > { %v488_v8 = vrot.slane %v486_v3, 1 }
 0x154   : > { %v385_v38 = vpop.permute.xlu1 %384 }
 0x155   : > { %v387_v40 = vmul.f32 %v385_v38, %v381_v35 }
 0x157   : > { %v389_v42 = vrot.slane %v387_v40, 1 }
 0x159   : > { %v391_v44 = vadd.f32 %v389_v42, %v350_v41 }
 0x15b   : > { %v399_v45 = vadd.f32 %v397_v43, %v391_v44 }
 0x15c   : > { %v311_v47 = vpop.permute.xlu1 %310 }
 0x15d   : > { %v317_v49 = vmul.f32 %v314_v25, %v311_v47  ;;  %v414_v6 = vadd.f32 %v412_v62, %v399_v45 }
 0x15f   : > { %v328_v52 = vadd.f32 %v326_v48, %v317_v49 }
 0x161   : > { %v351_v54 = vadd.f32 %v349_v51, %v328_v52 }
 0x163   : > { %v392_v57 = vadd.f32 %v389_v42, %v351_v54 }
 0x164   : > { %v461_v60 = vpop.permute.xlu1 %460 }
 0x165   : > { %v400_v63 = vadd.f32 %v397_v43, %v392_v57  ;;  %v463_v1 = vmul.f32 %v461_v60, %v457_v56 }
 0x167   : > { %v415_v5 = vadd.f32 %v412_v62, %v400_v63  ;;  %v465_v7 = vrot.slane %v463_v1, 1 }
 0x169   : > { %v467_v2 = vadd.f32 %v465_v7, %v414_v6  ;;  %v468_v4 = vadd.f32 %v465_v7, %v415_v5 }
 0x16b   : > { %v475_v9 = vadd.f32 %v473_v0, %v467_v2  ;;  %v476_v10 = vadd.f32 %v473_v0, %v468_v4 }
 0x16d   : > { %v490_v11 = vadd.f32 %v488_v8, %v475_v9  ;;  %v491_v12 = vadd.f32 %v488_v8, %v476_v10 }
 0x16f   : > { %v495_v13 = vrot.slane %v490_v11, 7  ;;  %v496_v14 = vrot.slane %v491_v12, 7 }
 0x171   : > { %v497_v15 = vsel %vm494_vm7, %v495_v13, %v496_v14 }
 0x172   : > { %v500_v16 = vsel %vm499_vm8, %v497_v15, 0.0 }
 0x173   : > { %v501_v17 = vrot.slane %v500_v16, 4 }
 0x175   : > { %v502_v18 = vadd.f32 %v501_v17, %v500_v16 }
 0x177   : > { %v503_v19 = vrot.slane %v502_v18, 2 }
 0x179   : > { %v504_v20 = vadd.f32 %v503_v19, %v502_v18 }
 0x17b   : > { %v505_v21 = vrot.slane %v504_v20, 1 }
 0x17d   : > { %v506_v22 = vadd.f32 %v505_v21, %v504_v20 }
 0x17f   : > { %v507_v24 = vmul.f32 0.00390625, %v506_v22 }
 0x181   : > { %v509_v25 = vadd.f32 %v508_v23, %v507_v24 }
 0x183   : > { %511 = vst.msk [vmem:[%s206_s27] sm:$0x1] %vm510_vm9, %v509_v25 }
 0x184   : > { %767 = shalt.err (!%p764_p10)
}
 0x185   : > { %620 = dma.vmem_to_hbm [thread:$0]  (%p906_p7), %s524_s28, 16, %s526_s29, %s513_s30  }
 0x186 PF: > { %s537_s10 = sand.u32 1, %s798_s12   ;;  %p1024_p12 = scmp.ge.s32.totalorder %s810_s15, 2 }
 0x187   : > { %s538_s25 = scalar_lea.sflag [#allocation4], %s537_s10 }
 0x188   : > { %p631_p13 = pnand %p1024_p12, %p874_p6 }
 0x18a   : > { %p632_p0 = pneg %p631_p13 }
 0x18c   : > { %793 = dma.done.wait (%p632_p0), %s538_s25, 16  }
 0x18d   : > { %795 = vsyncadd (%p632_p0), %s538_s25, 4294967280  ;;  %p17_p3 = scmp.ge.s32.totalorder %s892_s26, 4   ;;  %s1025_s12 = smov %s802_s13 }
 0x18e   : > { %s1026_s13 = smov %s806_s14  ;;  %s1027_s14 = smov %s902_s4 }
 0x18f   : > { %s1028_s15 = smov %s892_s26  ;;  %19 = sbr.rel (!%p17_p3) target bundleno = 6 (0x6), region = 89 }
 0x194   :  { %543 = vsyncpa [#allocation3], 1 }
 0x195   :  { %545 = vsyncpa [#allocation3 + $0x1], 1 }
 0x196   :  { %546 = vsyncpa [#allocation6], 1 }
 0x197   :  { %547 = vsyncpa [#allocation4], 1 }
 0x198   :  { %549 = vsyncpa [#allocation4 + $0x1], 1 }

</bundles_post_ra>
